<compile_context>
chip_gen: v7x
topology: tpu7x:2x2x1
jax: 0.10.0
libtpu: 0.0.40
codegen_flags: <defaults>
</compile_context>

<pallas_src>
import functools
import math

import jax
import jax.numpy as jnp
from jax.experimental import pallas as pl
from jax.experimental.pallas import tpu as pltpu


# ----------------------------------------------------------------------------
# Tile selection helpers
# ----------------------------------------------------------------------------
def _pick_tile(dim, preferred, aligns):
    """Largest tile <= preferred that is a multiple of one of `aligns`
    (tried in order) and divides `dim` exactly; falls back to the full dim
    (which always satisfies the (8,128) block rule)."""
    if dim <= preferred:
        return dim
    for align in aligns:
        t = (preferred // align) * align
        while t >= align:
            if dim % t == 0:
                return t
            t -= align
    return dim


def _vmem_footprint(tn, to, tk, code, itemsize):
    """Approximate per-step VMEM residency: double-buffered inputs/outputs
    plus the persistent f32 scratch accumulators."""
    dbuf = 2 * itemsize * (
        tn * tk          # x tile
        + tk * to        # W tile
        + tk * code      # A tile
        + code * to      # Bc tile
        + to             # bias_comb tile
        + tn * to        # output tile
    )
    scratch = 4 * (tn * to + tn * code)
    return dbuf + scratch


def _vmem_budget_bytes():
    """Per-generation VMEM budget (leave headroom for compiler scratch)."""
    cap = 64 * 1024 * 1024  # conservative default (v7x per-TC physical VMEM)
    try:
        info = pltpu.get_tpu_info()
        cap = int(getattr(info, "vmem_capacity_bytes", cap))
    except Exception:
        pass
    return (cap * 3) // 4   # ~48 MiB on v7x, ~96 MiB on v5e/v6e


def _choose_tiles(N, in_f, out_f, code, itemsize, budget):
    # Sublane packing of the input dtype: 8 (f32) / 16 (bf16) / 32 (int8/fp8).
    sub = max(8, 32 // max(itemsize, 1))
    # Try progressively smaller preferred tiles until the footprint fits.
    prefs = [
        (512, 512, 1024), (512, 512, 512), (256, 512, 512),
        (256, 256, 512), (256, 256, 256), (128, 256, 256),
        (128, 128, 256), (64, 128, 128), (32, 128, 128), (sub, 128, 128),
    ]
    best = None
    for pn, po, pk in prefs:
        tn = _pick_tile(N, pn, (sub,))
        to = _pick_tile(out_f, po, (256, 128))
        tk = _pick_tile(in_f, pk, (256, 128))
        fp = _vmem_footprint(tn, to, tk, code, itemsize)
        best = (tn, to, tk, fp)
        if fp <= budget:
            return best
    # TODO(synk): pad/mask the last tile (pl.cdiv grid + bounds checks) for
    # awkward non-divisible in_f/out_f instead of degrading to full-dim tiles.
    return best


# ----------------------------------------------------------------------------
# Kernel
# ----------------------------------------------------------------------------
def geps_linear1d_kernel(x_ref, w_ref, a_ref, bc_ref, bias_ref, o_ref,
                         acc_ref, xa_ref):
    o = pl.program_id(2)
    k = pl.program_id(3)
    nk = pl.num_programs(3)

    @pl.when(k == 0)
    def _init_acc():
        acc_ref[...] = jnp.zeros_like(acc_ref)

    @pl.when((o == 0) & (k == 0))
    def _init_xa():
        xa_ref[...] = jnp.zeros_like(xa_ref)

    x = x_ref[0]                                                   # (tn, tk)

    # Main GEMM partial: x_tile @ W_tile, f32 accumulation in VMEM scratch.
    acc_ref[...] += jnp.dot(x, w_ref[...], preferred_element_type=jnp.float32)

    # Low-rank partial x_tile @ A_tile: computed once per (b, n) on the first
    # output tile and reused for all o tiles (o axis is "arbitrary", so this
    # scratch is never split across TensorCores).
    @pl.when(o == 0)
    def _xa_step():
        xa_ref[...] += jnp.dot(x, a_ref[...],
                               preferred_element_type=jnp.float32)

    @pl.when(k == nk - 1)
    def _finalize():
        # Single tiny MXU dot (K = code) + one elementwise pass + one store.
        corr = jnp.dot(xa_ref[...], bc_ref[0].astype(jnp.float32),
                       preferred_element_type=jnp.float32)          # (tn, to)
        bias_row = bias_ref[0].astype(jnp.float32)                  # (1, to)
        o_ref[0] = (acc_ref[...] + corr + bias_row).astype(o_ref.dtype)


# ----------------------------------------------------------------------------
# Wrapper
# ----------------------------------------------------------------------------
def geps_linear1d(x, codes, weight, A, B, bias, bias_context, factor=1):
    Bsz, N, in_f = x.shape
    out_f = weight.shape[1]
    code = A.shape[1]
    factor = float(factor)

    # Hoisted code-dimension contractions (tiny; removes the in-kernel
    # code^2 epilogue entirely). `factor` is folded in here.
    bc = factor * jnp.einsum('brp,pj->brj', codes, B)               # (B, code, out_f)
    diag = jnp.diagonal(codes, axis1=-2, axis2=-1)                  # (B, code)
    bias_comb = (bias[None, :]
                 + factor * jnp.einsum('br,rj->bj', diag, bias_context))
    bias_comb = bias_comb.reshape(Bsz, 1, out_f)                    # (B, 1, out_f)

    budget = _vmem_budget_bytes()
    tn, to, tk, footprint = _choose_tiles(N, in_f, out_f, code,
                                          jnp.dtype(x.dtype).itemsize, budget)
    vmem_limit = min(budget, max(32 * 1024 * 1024, 2 * footprint))

    grid = (Bsz, N // tn, out_f // to, in_f // tk)

    return pl.pallas_call(
        geps_linear1d_kernel,
        out_shape=jax.ShapeDtypeStruct((Bsz, N, out_f), x.dtype),
        grid_spec=pltpu.PrefetchScalarGridSpec(
            num_scalar_prefetch=0,
            grid=grid,
            in_specs=[
                pl.BlockSpec((1, tn, tk), lambda b, n, o, k: (b, n, k)),      # x
                pl.BlockSpec((tk, to), lambda b, n, o, k: (k, o)),            # weight
                pl.BlockSpec((tk, code), lambda b, n, o, k: (k, 0)),          # A
                pl.BlockSpec((1, code, to), lambda b, n, o, k: (b, 0, o)),    # Bc
                pl.BlockSpec((1, 1, to), lambda b, n, o, k: (b, 0, o)),       # bias_comb
            ],
            out_specs=pl.BlockSpec((1, tn, to), lambda b, n, o, k: (b, n, o)),
            scratch_shapes=[
                pltpu.VMEM((tn, to), jnp.float32),    # x@W accumulator
                pltpu.VMEM((tn, code), jnp.float32),  # x@A accumulator (reused over o)
            ],
        ),
        compiler_params=pltpu.CompilerParams(
            # o must be "arbitrary": its scratch (xa) is filled only at o==0.
            dimension_semantics=("parallel", "parallel", "arbitrary", "arbitrary"),
            vmem_limit_bytes=int(vmem_limit),
        ),
    )(x, weight, A, bc, bias_comb)


# ----------------------------------------------------------------------------
# Pure-JAX reference (mirrors the PyTorch forward)
# ----------------------------------------------------------------------------
def _reference(x, codes, weight, A, B, bias, bias_context, factor=1):
    weights = jnp.einsum('ir,brp->bip', A, codes)
    context_weights = jnp.einsum('bir,rj->bij', weights, B)
    diag = jnp.diagonal(codes, axis1=-2, axis2=-1)
    context_bias = diag @ bias_context
    combined_weight = weight + factor * context_weights
    combined_bias = bias + factor * context_bias
    return jnp.einsum('bni,bij->bnj', x, combined_weight) + combined_bias[:, None, :]


def _kaiming_uniform(key, shape, a=math.sqrt(5)):
    fan_in = shape[0]
    gain = math.sqrt(2.0 / (1 + a ** 2))
    bound = gain * math.sqrt(3.0 / fan_in)
    return jax.random.uniform(key, shape, jnp.float32, -bound, bound)


if __name__ == "__main__":
    Bsz, N, in_f, out_f, code, factor = 2, 8, 32, 32, 2, 1

    key = jax.random.PRNGKey(0)
    k = jax.random.split(key, 7)

    weight = _kaiming_uniform(k[0], (in_f, out_f))
    A = _kaiming_uniform(k[1], (in_f, code))
    Bp = _kaiming_uniform(k[2], (code, out_f))
    bound = 1.0 / math.sqrt(in_f)
    bias = jax.random.uniform(k[3], (out_f,), jnp.float32, -bound, bound)
    bias_context = jax.random.uniform(k[4], (code, out_f), jnp.float32, -bound, bound)

    x = jax.random.normal(k[5], (Bsz, N, in_f), jnp.float32)
    codes = jax.random.normal(k[6], (Bsz, code, code), jnp.float32)

    out = geps_linear1d(x, codes, weight, A, Bp, bias, bias_context, factor)
    out = jax.block_until_ready(out)

    ref = _reference(x, codes, weight, A, Bp, bias, bias_context, factor)
    assert out.shape == (Bsz, N, out_f)
    assert jnp.allclose(out, ref, atol=1e-5, rtol=1e-5), "mismatch vs reference"

    print("KERNEL_OK")
</pallas_src>

<mosaic_0001>
module attributes {stable_mosaic.version = 11 : i64} {
  func.func @geps_linear1d_kernel(%arg0: i32, %arg1: i32, %arg2: i32, %arg3: i32, %arg4: memref<1x8x32xf32, #tpu.memory_space<vmem>>, %arg5: memref<32x32xf32, #tpu.memory_space<vmem>>, %arg6: memref<32x2xf32, #tpu.memory_space<vmem>>, %arg7: memref<1x2x32xf32, #tpu.memory_space<vmem>>, %arg8: memref<1x1x32xf32, #tpu.memory_space<vmem>>, %arg9: memref<1x8x32xf32, #tpu.memory_space<vmem>>, %arg10: memref<8x32xf32, #tpu.memory_space<vmem>>, %arg11: memref<8x2xf32, #tpu.memory_space<vmem>>) attributes {dimension_semantics = [#tpu.dimension_semantics<parallel>, #tpu.dimension_semantics<parallel>, #tpu.dimension_semantics<arbitrary>, #tpu.dimension_semantics<arbitrary>], iteration_bounds = array<i64: 2, 1, 1, 1>, scalar_prefetch = 0 : i64, scratch_operands = 2 : i64, tpu.core_type = #tpu.core_type<tc>, window_params = [{transform_indices = @transform_0, window_bounds = array<i64: 1, 8, 32>}, {transform_indices = @transform_1, window_bounds = array<i64: 32, 32>}, {transform_indices = @transform_2, window_bounds = array<i64: 32, 2>}, {transform_indices = @transform_3, window_bounds = array<i64: 1, 2, 32>}, {transform_indices = @transform_4, window_bounds = array<i64: 1, 1, 32>}, {transform_indices = @transform_5, window_bounds = array<i64: 1, 8, 32>}]} {
    %c0_i32 = arith.constant 0 : i32
    %0 = arith.cmpi eq, %arg3, %c0_i32 : i32
    %1 = arith.extui %0 : i1 to i32
    %c0_i32_0 = arith.constant 0 : i32
    %2 = arith.cmpi ne, %1, %c0_i32_0 : i32
    scf.if %2 {
      %cst_16 = arith.constant 0.000000e+00 : f32
      %21 = vector.broadcast %cst_16 : f32 to vector<8x32xf32>
      %c0_17 = arith.constant 0 : index
      %c0_18 = arith.constant 0 : index
      %22 = vector.load %arg10[%c0_17, %c0_18] : memref<8x32xf32, #tpu.memory_space<vmem>>, vector<8x32xf32>
      tpu.vector_store %arg10[%c0_17, %c0_18], %21 {strides = array<i32>} : memref<8x32xf32, #tpu.memory_space<vmem>>, vector<8x32xf32>,
    } else {
    }
    %c0_i32_1 = arith.constant 0 : i32
    %3 = arith.cmpi eq, %arg2, %c0_i32_1 : i32
    %c0_i32_2 = arith.constant 0 : i32
    %4 = arith.cmpi eq, %arg3, %c0_i32_2 : i32
    %5 = arith.andi %3, %4 : i1
    %6 = arith.extui %5 : i1 to i32
    %c0_i32_3 = arith.constant 0 : i32
    %7 = arith.cmpi ne, %6, %c0_i32_3 : i32
    scf.if %7 {
      %cst_16 = arith.constant 0.000000e+00 : f32
      %21 = vector.broadcast %cst_16 : f32 to vector<8x2xf32>
      %c0_17 = arith.constant 0 : index
      %c0_18 = arith.constant 0 : index
      %22 = vector.load %arg11[%c0_17, %c0_18] : memref<8x2xf32, #tpu.memory_space<vmem>>, vector<8x2xf32>
      tpu.vector_store %arg11[%c0_17, %c0_18], %21 {strides = array<i32>} : memref<8x2xf32, #tpu.memory_space<vmem>>, vector<8x2xf32>,
    } else {
    }
    %c0 = arith.constant 0 : index
    %c0_4 = arith.constant 0 : index
    %c0_5 = arith.constant 0 : index
    %8 = vector.load %arg4[%c0, %c0_4, %c0_5] : memref<1x8x32xf32, #tpu.memory_space<vmem>>, vector<1x8x32xf32>
    %9 = vector.shape_cast %8 : vector<1x8x32xf32> to vector<8x32xf32>
    %c0_6 = arith.constant 0 : index
    %c0_7 = arith.constant 0 : index
    %10 = vector.load %arg10[%c0_6, %c0_7] : memref<8x32xf32, #tpu.memory_space<vmem>>, vector<8x32xf32>
    %c0_8 = arith.constant 0 : index
    %c0_9 = arith.constant 0 : index
    %11 = vector.load %arg5[%c0_8, %c0_9] : memref<32x32xf32, #tpu.memory_space<vmem>>, vector<32x32xf32>
    %cst = arith.constant dense<0.000000e+00> : vector<8x32xf32>
    %12 = tpu.matmul %9, %11, %cst {dimension_numbers = #tpu.dot_dimension_numbers<[1], [0], [0], [1], [0, 0, 1, 1], [], []>} : vector<8x32xf32>, vector<32x32xf32>, vector<8x32xf32> -> vector<8x32xf32>
    %13 = arith.addf %10, %12 : vector<8x32xf32>
    %c0_10 = arith.constant 0 : index
    %c0_11 = arith.constant 0 : index
    %14 = vector.load %arg10[%c0_10, %c0_11] : memref<8x32xf32, #tpu.memory_space<vmem>>, vector<8x32xf32>
    tpu.vector_store %arg10[%c0_10, %c0_11], %13 {strides = array<i32>} : memref<8x32xf32, #tpu.memory_space<vmem>>, vector<8x32xf32>,
    %c0_i32_12 = arith.constant 0 : i32
    %15 = arith.cmpi eq, %arg2, %c0_i32_12 : i32
    %16 = arith.extui %15 : i1 to i32
    %c0_i32_13 = arith.constant 0 : i32
    %17 = arith.cmpi ne, %16, %c0_i32_13 : i32
    scf.if %17 {
      %c0_16 = arith.constant 0 : index
      %c0_17 = arith.constant 0 : index
      %21 = vector.load %arg11[%c0_16, %c0_17] : memref<8x2xf32, #tpu.memory_space<vmem>>, vector<8x2xf32>
      %c0_18 = arith.constant 0 : index
      %c0_19 = arith.constant 0 : index
      %22 = vector.load %arg6[%c0_18, %c0_19] : memref<32x2xf32, #tpu.memory_space<vmem>>, vector<32x2xf32>
      %cst_20 = arith.constant dense<0.000000e+00> : vector<8x2xf32>
      %23 = tpu.matmul %9, %22, %cst_20 {dimension_numbers = #tpu.dot_dimension_numbers<[1], [0], [0], [1], [0, 0, 1, 1], [], []>} : vector<8x32xf32>, vector<32x2xf32>, vector<8x2xf32> -> vector<8x2xf32>
      %24 = arith.addf %21, %23 : vector<8x2xf32>
      %c0_21 = arith.constant 0 : index
      %c0_22 = arith.constant 0 : index
      %25 = vector.load %arg11[%c0_21, %c0_22] : memref<8x2xf32, #tpu.memory_space<vmem>>, vector<8x2xf32>
      tpu.vector_store %arg11[%c0_21, %c0_22], %24 {strides = array<i32>} : memref<8x2xf32, #tpu.memory_space<vmem>>, vector<8x2xf32>,
    } else {
    }
    %c0_i32_14 = arith.constant 0 : i32
    %18 = arith.cmpi eq, %arg3, %c0_i32_14 : i32
    %19 = arith.extui %18 : i1 to i32
    %c0_i32_15 = arith.constant 0 : i32
    %20 = arith.cmpi ne, %19, %c0_i32_15 : i32
    scf.if %20 {
      %c0_16 = arith.constant 0 : index
      %c0_17 = arith.constant 0 : index
      %21 = vector.load %arg11[%c0_16, %c0_17] : memref<8x2xf32, #tpu.memory_space<vmem>>, vector<8x2xf32>
      %c0_18 = arith.constant 0 : index
      %c0_19 = arith.constant 0 : index
      %c0_20 = arith.constant 0 : index
      %22 = vector.load %arg7[%c0_18, %c0_19, %c0_20] : memref<1x2x32xf32, #tpu.memory_space<vmem>>, vector<1x2x32xf32>
      %23 = vector.shape_cast %22 : vector<1x2x32xf32> to vector<2x32xf32>
      %cst_21 = arith.constant dense<0.000000e+00> : vector<8x32xf32>
      %24 = tpu.matmul %21, %23, %cst_21 {dimension_numbers = #tpu.dot_dimension_numbers<[1], [0], [0], [1], [0, 0, 1, 1], [], []>} : vector<8x2xf32>, vector<2x32xf32>, vector<8x32xf32> -> vector<8x32xf32>
      %c0_22 = arith.constant 0 : index
      %c0_23 = arith.constant 0 : index
      %c0_24 = arith.constant 0 : index
      %25 = vector.load %arg8[%c0_22, %c0_23, %c0_24] : memref<1x1x32xf32, #tpu.memory_space<vmem>>, vector<1x1x32xf32>
      %26 = vector.shape_cast %25 : vector<1x1x32xf32> to vector<1x32xf32>
      %c0_25 = arith.constant 0 : index
      %c0_26 = arith.constant 0 : index
      %27 = vector.load %arg10[%c0_25, %c0_26] : memref<8x32xf32, #tpu.memory_space<vmem>>, vector<8x32xf32>
      %28 = arith.addf %27, %24 : vector<8x32xf32>
      %29 = vector.broadcast %26 : vector<1x32xf32> to vector<8x32xf32>
      %30 = arith.addf %28, %29 : vector<8x32xf32>
      %c0_27 = arith.constant 0 : index
      %c0_28 = arith.constant 0 : index
      %c0_29 = arith.constant 0 : index
      %31 = vector.load %arg9[%c0_27, %c0_28, %c0_29] : memref<1x8x32xf32, #tpu.memory_space<vmem>>, vector<1x8x32xf32>
      %32 = vector.shape_cast %31 : vector<1x8x32xf32> to vector<8x32xf32>
      %33 = vector.shape_cast %30 : vector<8x32xf32> to vector<1x8x32xf32>
      tpu.vector_store %arg9[%c0_27, %c0_28, %c0_29], %33 {strides = array<i32>} : memref<1x8x32xf32, #tpu.memory_space<vmem>>, vector<1x8x32xf32>,
    } else {
    }
    return
  }
  func.func @transform_0(%arg0: i32, %arg1: i32, %arg2: i32, %arg3: i32) -> (i32, i32, i32) {
    %c0_i32 = arith.constant 0 : i32
    return %arg0, %arg1, %arg3 : i32, i32, i32
  }
  func.func @transform_1(%arg0: i32, %arg1: i32, %arg2: i32, %arg3: i32) -> (i32, i32) {
    %c0_i32 = arith.constant 0 : i32
    return %arg3, %arg2 : i32, i32
  }
  func.func @transform_2(%arg0: i32, %arg1: i32, %arg2: i32, %arg3: i32) -> (i32, i32) {
    %c0_i32 = arith.constant 0 : i32
    %c0_i32_0 = arith.constant 0 : i32
    return %arg3, %c0_i32 : i32, i32
  }
  func.func @transform_3(%arg0: i32, %arg1: i32, %arg2: i32, %arg3: i32) -> (i32, i32, i32) {
    %c0_i32 = arith.constant 0 : i32
    %c0_i32_0 = arith.constant 0 : i32
    return %arg0, %c0_i32, %arg2 : i32, i32, i32
  }
  func.func @transform_4(%arg0: i32, %arg1: i32, %arg2: i32, %arg3: i32) -> (i32, i32, i32) {
    %c0_i32 = arith.constant 0 : i32
    %c0_i32_0 = arith.constant 0 : i32
    return %arg0, %c0_i32, %arg2 : i32, i32, i32
  }
  func.func @transform_5(%arg0: i32, %arg1: i32, %arg2: i32, %arg3: i32) -> (i32, i32, i32) {
    %c0_i32 = arith.constant 0 : i32
    return %arg0, %arg1, %arg2 : i32, i32, i32
  }
}

</mosaic_0001>

<bundles_post_ra>
// kernel: tpu_custom_call.1
= control target key start
LH: loop header
LB: loop body
LE: loop exit
PB: predicated region body
PF: predicated region fallthrough
CT: control target
= control target key end

     0   :  { %10 = vsyncpa [#allocation5], 0  ;;  %s1326_s0 = inlined_call_operand.hbm [shape: f32[2,8,32], index: 0, kind: input, shape index: {}]   ;;  %s1327_s1 = inlined_call_operand.vmem [shape: f32[32,32], index: 1, kind: input, shape index: {}]   ;;  %s1328_s2 = inlined_call_operand.vmem [shape: f32[32,2], index: 2, kind: input, shape index: {}]   ;;  %s1329_s3 = inlined_call_operand.vmem [shape: f32[2,2,32], index: 3, kind: input, shape index: {}]   ;;  %s1330_s4 = inlined_call_operand.vmem [shape: f32[2,1,32], index: 4, kind: input, shape index: {}]   ;;  %s1331_s5 = inlined_call_operand.hbm [shape: f32[2,8,32], index: 5, kind: output, shape index: {}]  }
   0x1   :  { %12 = vsyncpa [#allocation5 + $0x1], 0 }
   0x2   :  { %13 = vsyncpa [#allocation6], 0 }
   0x3   :  { %15 = vsyncpa [#allocation6 + $0x1], 0  ;;  %s1104_s18 = smov 0   ;;  %s1106_s19 = smov 0  }
   0x4   :  { %s1108_s20 = smov 0   ;;  %s1110_s21 = smov 0  }
   0x5   :  { %s1112_s22 = smov 0   ;;  %s1114_s23 = smov 0  }
   0x6 LB: > { %s818_s24 = sadd.s32 4294967295, %s1067_s23   ;;  %s819_s25 = sadd.s32 4294967294, %s1067_s23   ;;  %s1067_s23 = sphi %s1114_s23, %s21_s23   ;;  %s1063_s22 = sphi %s1112_s22, %s1347_s22   ;;  %s1059_s21 = sphi %s1110_s21, %s1346_s21   ;;  %s1055_s20 = sphi %s1108_s20, %s1345_s20   ;;  %s1051_s19 = sphi %s1106_s19, %s1344_s19   ;;  %s1047_s18 = sphi %s1104_s18, %s1343_s18  }
   0x7   : > { %s47_s26 = sadd.s32 1, %s1063_s22  ;;  %s58_s27 = sadd.s32 1, %s1055_s20 }
   0x8   : > { %p49_p0 = scmp.ge.s32.totalorder %s47_s26, 2  ;;  %p65_p1 = scmp.ne.s32.totalorder %s1055_s20, %s1051_s19 }
   0x9   : > { %p66_p2 = scmp.eq.s32.totalorder %s1067_s23, 0  ;;  %p71_p3 = scmp.ne.s32.totalorder %s1051_s19, %s1047_s18 }
   0xa   : > { %s1349_s26 = smov (%p49_p0, %s47_s26), 0  ;;  %p72_p5 = scmp.eq.s32.totalorder %s818_s24, 0 }
   0xb   : > { %p1145_p4 = por %p66_p2, %p65_p1  ;;  %s51_s29 = ssub.s32 %s1063_s22, %s1349_s26 }
   0xc   : > { %p209_p6 = scmp.eq.s32.totalorder %s818_s24, 1  ;;  %p56_p7 = scmp.eq.s32.totalorder %s51_s29, 0 }
   0xd   : > { %p1151_p8 = por %p72_p5, %p71_p3  ;;  %p215_p10 = scmp.eq.s32.totalorder %s819_s25, 1 }
   0xe   : > { %p1155_p9 = por %p209_p6, %p65_p1  ;;  %p902_p13 = scmp.lt.s32.totalorder %s1067_s23, 2 }
   0xf   : > { %s1160_s7 = scalar_select %p56_p7, %s1055_s20, %s58_s27  }
  0x10   : > { %s1335_s6 = scalar_select %p1155_p9, 1, 0 }
  0x11   : > { %p1162_p11 = por %p215_p10, %p71_p3  ;;  %s256_s9 = sand.u32 1, %s1055_s20  }
  0x12   : > { %s824_s10 = sshll.u32 %s256_s9, 3  ;;  %s825_s11 = sshll.u32 %s1063_s22, 7 }
  0x13   : > { %s1336_s8 = scalar_select %p1162_p11, 1, 0 }
  0x14   : > { %s1173_s14 = scalar_lea.hbm %s1326_s0, %s825_s11  ;;  %s260_s15 = scalar_lea.vmem [#allocation4], %s824_s10 }
  0x15   : > { %s269_s16 = sshll.u32 %s260_s15, 4  ;;  %p1179_p0 = pnand %p902_p13, %p1145_p4  ;;  %s1175_s16 = int_to_ptr.vmem [resolvable:$true] %s269_s16 }
  0x16   : > { %s257_s24 = scalar_lea.sflag [#allocation5], %s256_s9  ;;  %s955_s25 = scalar_lea.hbm %s1173_s14, 128 }
  0x17   : > { %p956_p3 = scmp.ne.s32.totalorder %s1173_s14, %s955_s25  ;;  %p957_p5 = pneg %p1179_p0 }
  0x18   : > { %s960_s28 = scalar_lea.hbm %s1326_s0, 256  ;;  %p961_p4 = scmp.lt.u32.totalorder %s1173_s14, %s1326_s0 }
  0x19   : > { %p958_p6 = pnand %p957_p5, %p956_p3  ;;  %p962_p10 = scmp.lt.u32.totalorder %s960_s28, %s955_s25 }
  0x1a   : > { %p964_p12 = scmp.lt.u32.totalorder %s955_s25, %s1173_s14 }
  0x1b   : > { %p959_p7 = pneg %p958_p6  ;;  %p963_p13 = por %p962_p10, %p961_p4 }
  0x1d   : > { %p965_p1 = por %p964_p12, %p963_p13 }
  0x1f   : > { %p966_p2 = pnand %p965_p1, %p959_p7 }
  0x21   : > { %969 = shalt.err (!%p966_p2)
}
  0x22   : > { %s970_s9 = scalar_lea.vmem %s1175_s16, 128  ;;  %s1069_s12 = smov [#allocation4]  }
  0x23   : > { %p971_p3 = scmp.ne.s32.totalorder %s1175_s16, %s970_s9  ;;  %s975_s13 = sshll.u32 %s1069_s12, 4  ;;  %s976_s13 = int_to_ptr.vmem [resolvable:$false] %s975_s13 }
  0x24   : > { %s977_s15 = scalar_lea.vmem %s976_s13, 256  ;;  %p978_p9 = scmp.lt.s32.totalorder %s1175_s16, %s976_s13 }
  0x25   : > { %p973_p6 = pnand %p971_p3, %p957_p5  ;;  %p979_p4 = scmp.lt.s32.totalorder %s977_s15, %s970_s9 }
  0x27   : > { %p974_p11 = pneg %p973_p6  ;;  %p980_p10 = por %p979_p4, %p978_p9 }
  0x29   : > { %p981_p12 = pnand %p980_p10, %p974_p11 }
  0x2b   : > { %984 = shalt.err (!%p981_p12)
}
  0x2c   : > { %897 = dma.hbm_to_vmem [thread:$0]  (!%p1179_p0), %s1173_s14, 128, %s1175_s16, %s257_s24  }
  0x2d   : > { %p1338_p1 = scmp.lt.s32.totalorder %s1067_s23, 3  ;;  %p1339_p2 = scmp.ge.s32.totalorder %s1067_s23, 1 }
  0x2f   : > { %p294_p5 = pnand %p1339_p2, %p1338_p1 }
  0x30   : > { %s1215_s25 = sand.u32 (!%p294_p5), 1, %s1051_s19  }
  0x31   : > { %297 = sbr.rel (%p294_p5) target bundleno = 520 (0x208), region = 40  ;;  %s827_s27 = sshll.u32 (!%p294_p5), %s1215_s25, 3 }
  0x32   : > { %s300_s29 = scalar_lea.sflag (!%p294_p5), [#allocation5], %s1215_s25  ;;  %s1221_s17 = scalar_lea.vmem (!%p294_p5), [#allocation4], %s827_s27 }
  0x38   : > { %1038 = dma.done.wait (%p1151_p8), %s300_s29, 128  }
  0x39   : > { %1040 = vsyncadd (%p1151_p8), %s300_s29, 4294967168  ;;  %vm388_vm0 = vcmask 261120   ;;  %v1070_v0 = vmov 0.0|0.0   ;;  %vm1071_vm1 = vmmov 0   ;;  %v1072_v1 = vmov 0.0   ;;  %v483_v2 = vld [vmem:[%s1328_s2] sm:$0xff] }
  0x3a   : > { %884 = vmatprep.subr.bf16.mxu1 %v1070_v0  ;;  %870 = vmatprep.mubr.msk.f32.mxu1 %vm1071_vm1, %v1072_v1  ;;  %389 = vst.msk [vmem:[#allocation2] sm:$0xff] %vm388_vm0, %v1072_v1  ;;  %vm395_vm2 = vcmask 15360   ;;  %v484_v3 = vld [vmem:[%s1328_s2 + $0x8] sm:$0xff]  ;;  %v485_v4 = vld [vmem:[%s1328_s2 + $0x10] sm:$0xff]  ;;  %v486_v6 = vld [vmem:[%s1328_s2 + $0x18] sm:$0xff]  ;;  %p371_p8 = scmp.lt.s32.totalorder %s1059_s21, 1 }
  0x3b   : > { %878 = vmatprep.subr.bf16.mxu0 %v1070_v0  ;;  %859 = vmatprep.mubr.msk.f32.mxu0 %vm1071_vm1, %v1072_v1  ;;  %396 = vst.msk [vmem:[#allocation3] sm:$0xff] %vm395_vm2, %v1072_v1  ;;  %v885_v5 = vpack.c.bf16 %v484_v3, %v483_v2  ;;  %v399_v7 = vld [vmem:[%s1327_s1] sm:$0xff]  ;;  %v400_v8 = vld [vmem:[%s1327_s1 + $0x8] sm:$0xff]  ;;  %v401_v9 = vld [vmem:[%s1327_s1 + $0x10] sm:$0xff]  ;;  %v888_v11 = vpack.c.bf16 %v486_v6, %v485_v4  ;;  %vm569_vm3 = vcmask 1041408   ;;  %s836_s29 = sshll.u32 %s1059_s21, 7 }
  0x3c   : > { %v402_v10 = vld [vmem:[%s1327_s1 + $0x18] sm:$0xff]  ;;  %v879_v12 = vpack.c.bf16 %v400_v8, %v399_v7  ;;  %s372_s28 = scalar_select %p371_p8, %s1059_s21, 1 }
  0x3d   : > { %886 = vmatpush3.bf16.msra.mxu1 %v885_v5  ;;  %v882_v13 = vpack.c.bf16 %v402_v10, %v401_v9  ;;  %v397_v14 = vld [vmem:[%s1221_s17] sm:$0xff]  ;;  %s355_s14 = scalar_lea.vmem [#allocation7], %s827_s27  ;;  %p1340_p11 = scmp.ne.s32.totalorder %s1335_s6, 0 }
  0x3e   : > { %887 = vmatprep.subr.bf16.mxu1 %v1070_v0  ;;  %880 = vmatpush3.bf16.msra.mxu0 %v879_v12  ;;  %s829_s10 = sshll.u32 %s372_s28, 1  ;;  %s383_s15 = scalar_lea.vmem %s1330_s4, %s372_s28 }
  0x3f   : > { %881 = vmatprep.subr.bf16.mxu0 %v1070_v0  ;;  %s377_s12 = scalar_lea.vmem %s1329_s3, %s829_s10  ;;  %v834_v27 = vld [vmem:[%s383_s15] ss:$0 sm:$0xff]  ;;  %s670_s16 = sshll.u32 %s355_s14, 4  ;;  %s1278_s16 = int_to_ptr.vmem [resolvable:$true] %s670_s16 }
  0x40   : > { %v564_v15 = vld [vmem:[%s377_s12] sm:$0x3]  ;;  %s1276_s10 = scalar_lea.hbm %s1331_s5, %s836_s29  ;;  %s655_s28 = scalar_lea.sflag [#allocation6], %s1215_s25 }
  0x41   : > { %889 = vmatpush3.bf16.msra.mxu1 %v888_v11  ;;  %v398_v18 = vld [vmem:[#allocation2] sm:$0xff]  ;;  %s985_s21 = scalar_lea.vmem %s1278_s16, 128  ;;  %s1073_s27 = smov [#allocation7]  }
  0x42   : > { %883 = vmatpush3.bf16.msra.mxu0 %v882_v13  ;;  %v482_v16 = vld [vmem:[#allocation3] sm:$0xff]  ;;  %p986_p9 = scmp.ne.s32.totalorder %s1278_s16, %s985_s21  ;;  %s989_s11 = sshll.u32 %s1073_s27, 4  ;;  %s990_s11 = int_to_ptr.vmem [resolvable:$false] %s989_s11 }
  0x43   : > { %873 = vmatprep.subr.mxu0 %v1072_v1  ;;  %s991_s9 = scalar_lea.vmem %s990_s11, 256  ;;  %p992_p13 = scmp.lt.s32.totalorder %s1278_s16, %s990_s11 }
  0x44   : > { %871 = vmatmul.mubr.msk.f32.vlgmr.msra.gmra.mrb[0].mxu1 %vm388_vm0, %v397_v14  ;;  %p987_p0 = pnand %p986_p9, %p1340_p11  ;;  %p993_p3 = scmp.lt.s32.totalorder %s991_s9, %s985_s21 }
  0x45   : > { %860 = vmatmul.mubr.msk.f32.vlgmr.msra.gmra.mrb[0].mxu0 %vm388_vm0, %v397_v14 }
  0x46   : > { %875 = vmatprep.mubr.msk.f32.mxu0 %vm1071_vm1, %v1072_v1  ;;  %874 = vmatpush3.msk.msra.mxu0 %vm569_vm3, %v564_v15  ;;  %p988_p7 = pneg %p987_p0  ;;  %p994_p6 = por %p993_p3, %p992_p13 }
  0x48   : > { %p995_p4 = pnand %p994_p6, %p988_p7 }
 0x117   : > { %v553_v17 = vpop.f32.mrb[0].mxu1 }
 0x118   : > { %v557_v19 = vadd.f32 %v553_v17, %v482_v16  ;;  %v872_v20 = vpop.f32.mrb[1].mxu1  ;;  %v473_v21 = vpop.f32.mrb[0].mxu0 }
 0x119   : > { %v477_v22 = vadd.f32 %v473_v21, %v398_v18  ;;  %v861_v23 = vpop.f32.mrb[1].mxu0 }
 0x11a   : > { %559 = vst.msk [vmem:[#allocation3] sm:$0xff] %vm395_vm2, %v557_v19 }
 0x11b   : > { %478 = vst.msk [vmem:[#allocation2] sm:$0xff] %vm388_vm0, %v477_v22 }
 0x121   : > { %v563_v24 = vld [vmem:[#allocation3] sm:$0xff] }
 0x122   : > { %876 = vmatmul.mubr.msk.f32.vlgmr.msra.gmra.mrb[2].mxu0 %vm395_vm2, %v563_v24  ;;  %v644_v25 = vld [vmem:[#allocation2] sm:$0xff] }
 0x1f5   : > { %v639_v26 = vpop.f32.mrb[2].mxu0 }
 0x1f6   : > { %v645_v28 = vadd.f32 %v644_v25, %v639_v26  ;;  %v877_v29 = vpop.f32.mrb[3].mxu0 }
 0x1f8   : > { %v652_v30 = vadd.f32 %v834_v27, %v645_v28 }
 0x1fa   : > { %653 = vst.msk [vmem:[%s355_s14] sm:$0xff] %vm388_vm0, %v652_v30 }
 0x1fb   : > { %998 = shalt.err (!%p995_p4)
}
 0x1fc   : > { %s999_s25 = scalar_lea.hbm %s1276_s10, 128  ;;  %s1003_s13 = scalar_lea.hbm %s1331_s5, 256 }
 0x1fd   : > { %p1000_p10 = scmp.ne.s32.totalorder %s1276_s10, %s999_s25  ;;  %p1004_p2 = scmp.lt.u32.totalorder %s1276_s10, %s1331_s5 }
 0x1fe   : > { %p1005_p5 = scmp.lt.u32.totalorder %s1003_s13, %s999_s25  ;;  %p1007_p9 = scmp.lt.u32.totalorder %s999_s25, %s1276_s10 }
 0x1ff   : > { %p1001_p12 = pnand %p1000_p10, %p1340_p11 }
 0x200   : > { %p1006_p8 = por %p1005_p5, %p1004_p2 }
 0x201   : > { %p1002_p1 = pneg %p1001_p12 }
 0x202   : > { %p1008_p0 = por %p1007_p9, %p1006_p8 }
 0x204   : > { %p1009_p7 = pnand %p1008_p0, %p1002_p1 }
 0x206   : > { %1012 = shalt.err (!%p1009_p7)
}
 0x207   : > { %892 = dma.vmem_to_hbm [thread:$0]  (%p1340_p11), %s1278_s16, 128, %s1276_s10, %s655_s28  }
 0x208 PF: > { %s682_s14 = sand.u32 1, %s1047_s18   ;;  %p1341_p13 = scmp.ne.s32.totalorder %s1336_s8, 0 }
 0x209   : > { %p1342_p3 = scmp.ge.s32.totalorder %s1067_s23, 2  ;;  %s683_s30 = scalar_lea.sflag [#allocation6], %s682_s14 }
 0x20b   : > { %p899_p6 = pnand %p1342_p3, %p1341_p13 }
 0x20d   : > { %1042 = dma.done.wait (!%p899_p6), %s683_s30, 128  }
 0x20e   : > { %1044 = vsyncadd (!%p899_p6), %s683_s30, 4294967168  ;;  %s21_s23 = sadd.s32 1, %s1067_s23   ;;  %s1343_s18 = smov %s1051_s19 }
 0x20f   : > { %p18_p4 = scmp.ge.s32.totalorder %s21_s23, 4   ;;  %s1344_s19 = smov %s1055_s20 }
 0x210   : > { %s1345_s20 = smov %s1160_s7  ;;  %s1346_s21 = smov %s1063_s22 }
 0x211   : > { %s1347_s22 = smov %s1349_s26  ;;  %20 = sbr.rel (!%p18_p4) target bundleno = 6 (0x6), region = 113 }
 0x218   :  { %688 = vsyncpa [#allocation5], 1 }
 0x219   :  { %690 = vsyncpa [#allocation5 + $0x1], 1 }
 0x21a   :  { %691 = vsyncpa [#allocation6], 1 }
 0x21b   :  { %693 = vsyncpa [#allocation6 + $0x1], 1 }

</bundles_post_ra>
